<compile_context>
chip_gen: v7x
topology: tpu7x:2x2x1
jax: 0.10.0
libtpu: 0.0.40
codegen_flags: <defaults>
</compile_context>

<pallas_src>
import jax
import jax.numpy as jnp
from jax.experimental import pallas as pl
from jax.experimental.pallas import tpu as pltpu


def _round_up(x: int, m: int) -> int:
    return (x + m - 1) // m * m


def _pick_tile(n: int, target: int, granule: int) -> int:
    """Largest tile (multiple of `granule`, <= target) with bounded padding waste.

    If the whole (alignment-padded) axis fits in one tile, use it.  Otherwise
    return the largest candidate whose padding waste is <= max(n/16, granule);
    if none qualifies, return the candidate minimizing the padded size.
    """
    n_al = _round_up(n, granule)
    target = max(granule, (target // granule) * granule)
    if n_al <= target:
        return n_al
    slack = max(n // 16, granule)
    best_pad, best_tile = None, granule
    for cand in range(target, 0, -granule):
        padded = _round_up(n, cand)
        if padded - n <= slack:
            return cand
        if best_pad is None or padded < best_pad:
            best_pad, best_tile = padded, cand
    return best_tile


def _make_rbf_kernel(x2_resident: bool):
    """Kernel body. x2_resident selects how the (D, tn) slab of X2^T is indexed."""

    def kernel(var_ref, x1_ref, x1sq_ref, x2t_ref, x2sq_ref, o_ref):
        # var_ref: scalar-prefetch ref in SMEM, shape (1,)
        var = var_ref[0]

        # s = c * ||x1 - x2||^2  with  c = -0.5 / lengthscale^2  (<= 0).
        # The wrapper folded c into the inputs:
        #   s = c*||x1||^2 + c*||x2||^2 + x1 . (-2c * x2)
        jj = pl.program_id(1) if x2_resident else 0
        x2t = x2t_ref[jj]                                   # (D, tn), lane layout
        s = (x1sq_ref[...] + x2sq_ref[...]
             + jnp.dot(x1_ref[...], x2t, preferred_element_type=jnp.float32))

        # s <= 0 mathematically; clamp cancellation noise so K(x, x) <= variance.
        o_ref[...] = (var * jnp.exp(jnp.minimum(s, 0.0))).astype(o_ref.dtype)

    return kernel


def rbf_kernel(
    X1,
    log_lengthscale,
    log_variance,
    X2=None,
    *,
    tm: int = 256,
    tn: int = 1024,
    out_dtype=jnp.float32,           # RECOMMENDED: jnp.bfloat16 (writeback-bound)
    force_x2_resident=None,          # None = auto (for tests / tuning)
    vmem_limit_bytes: int = 40 * 1024 * 1024,
):
    if X2 is None:
        X2 = X1

    X1 = jnp.asarray(X1, jnp.float32)
    X2 = jnp.asarray(X2, jnp.float32)
    N1, D = X1.shape
    N2, D2 = X2.shape
    assert D == D2, "feature dims must match"

    out_itemsize = jnp.dtype(out_dtype).itemsize
    g_m = max(8, 32 // out_itemsize)     # sublane granule (8 f32, 16 bf16)

    # Fold parameters once in the wrapper (not per tile):
    #   inv_ls2 = 1/lengthscale^2 = -2c,  c = -0.5*inv_ls2,  var = exp(lv)
    ll = jnp.asarray(log_lengthscale, jnp.float32).reshape(-1)[0]
    lv = jnp.asarray(log_variance, jnp.float32).reshape(-1)[0]
    inv_ls2 = jnp.exp(-2.0 * ll)
    c = -0.5 * inv_ls2
    var = jnp.exp(lv).reshape(1)         # -> SMEM via scalar prefetch

    # vreg-pressure guard: the (D, tn) X2^T slab is live in vregs during the dot.
    # Cap tn so it stays <= ~128 KiB (32 vregs).  No effect for small D.
    tn_cap = max(128, (128 * 1024 // max(4 * D, 1)) // 128 * 128)
    tn = min(tn, tn_cap)

    # Tile selection with bounded padding waste.
    tm_eff = _pick_tile(N1, tm, g_m)
    tn_eff = _pick_tile(N2, tn, 128)
    N1_pad = _round_up(N1, tm_eff)
    N2_pad = _round_up(N2, tn_eff)
    ni = N1_pad // tm_eff
    nj = N2_pad // tn_eff

    # v7x has 2 TensorCores: ensure >= 2 parallel blocks when possible so the
    # ("parallel","parallel") grid can be sharded across both.
    if ni * nj == 1:
        for f in (2, 4, 3):
            if (N1_pad // g_m) % f == 0:
                tm_eff, ni = N1_pad // f, f
                break
        else:
            for f in (2, 4, 3):
                if (N2_pad // 128) % f == 0:
                    tn_eff, nj = N2_pad // f, f
                    break

    X1p = X1 if N1_pad == N1 else jnp.pad(X1, ((0, N1_pad - N1), (0, 0)))
    X2p = X2 if N2_pad == N2 else jnp.pad(X2, ((0, N2_pad - N2), (0, 0)))

    # Wrapper-side precompute (once): scaled norms + pre-transposed, pre-scaled
    # X2 slabs -> kernel is dot -> add -> clamp -> exp -> store.
    x1sq_c = c * jnp.sum(X1p * X1p, axis=1, keepdims=True)            # (N1_pad, 1)
    x2sq_c = (c * jnp.sum(X2p * X2p, axis=1))[None, :]                # (1, N2_pad)
    x2t_blocks = (X2p * inv_ls2).reshape(nj, tn_eff, D).swapaxes(1, 2)  # (nj, D, tn)

    # Keep X2^T fully VMEM-resident when it fits comfortably (typical GP sizes).
    # Threshold raised to 12 MiB (counting potential double buffering).
    x2_resident = 2 * (N2_pad * D * 4) <= 12 * 1024 * 1024
    if force_x2_resident is not None:
        x2_resident = bool(force_x2_resident)

    if x2_resident:
        # i outer, j inner; the full X2^T slab has a constant block index.
        grid = (ni, nj)
        in_specs = [
            pl.BlockSpec((tm_eff, D), lambda i, j, vs: (i, 0)),       # X1 tile
            pl.BlockSpec((tm_eff, 1), lambda i, j, vs: (i, 0)),       # c*||x1||^2
            pl.BlockSpec((nj, D, tn_eff), lambda i, j, vs: (0, 0, 0)),  # X2^T (all)
            pl.BlockSpec((1, tn_eff), lambda i, j, vs: (0, j)),       # c*||x2||^2
        ]
        out_spec = pl.BlockSpec((tm_eff, tn_eff), lambda i, j, vs: (i, j))
    else:
        # j OUTER so the (D, tn) slab's block index is constant over the inner i
        # loop (not re-fetched); only the small X1 tile streams per step.
        grid = (nj, ni)
        in_specs = [
            pl.BlockSpec((tm_eff, D), lambda j, i, vs: (i, 0)),
            pl.BlockSpec((tm_eff, 1), lambda j, i, vs: (i, 0)),
            pl.BlockSpec((1, D, tn_eff), lambda j, i, vs: (j, 0, 0)),
            pl.BlockSpec((1, tn_eff), lambda j, i, vs: (0, j)),
        ]
        out_spec = pl.BlockSpec((tm_eff, tn_eff), lambda j, i, vs: (i, j))

    grid_spec = pltpu.PrefetchScalarGridSpec(
        num_scalar_prefetch=1,                 # var -> SMEM
        grid=grid,
        in_specs=in_specs,
        out_specs=out_spec,
    )

    cost = pl.CostEstimate(
        flops=2 * N1_pad * N2_pad * D,
        transcendentals=N1_pad * N2_pad,
        bytes_accessed=(N1_pad * N2_pad * out_itemsize
                        + (N1_pad + N2_pad) * (D + 1) * 4),
    )

    out = pl.pallas_call(
        _make_rbf_kernel(x2_resident),
        out_shape=jax.ShapeDtypeStruct((N1_pad, N2_pad), out_dtype),
        grid_spec=grid_spec,
        compiler_params=pltpu.CompilerParams(
            dimension_semantics=("parallel", "parallel"),
            vmem_limit_bytes=vmem_limit_bytes,
        ),
        cost_estimate=cost,
    )(var, X1p, x1sq_c, x2t_blocks, x2sq_c)

    if N1_pad != N1 or N2_pad != N2:
        out = out[:N1, :N2]
    return out


def rbf_reference(X1, log_lengthscale, log_variance, X2=None):
    if X2 is None:
        X2 = X1
    diff = (X1[:, None, :] - X2[None, :, :]) / jnp.exp(log_lengthscale)
    return jnp.exp(log_variance) * jnp.exp(-0.5 * jnp.sum(diff ** 2, axis=-1))


if __name__ == "__main__":
    key = jax.random.PRNGKey(0)
    k_x1, k_x2, k_ll, k_lv = jax.random.split(key, 4)

    N1, N2, D = 128, 128, 8          # input_dim = D (x_train.shape[1])
    X1 = jax.random.normal(k_x1, (N1, D), dtype=jnp.float32)
    X2 = jax.random.normal(k_x2, (N2, D), dtype=jnp.float32)

    # Parameter shapes match nn.Parameter(torch.randn(1)).
    log_lengthscale = jax.random.normal(k_ll, (1,), dtype=jnp.float32)
    log_variance = jax.random.normal(k_lv, (1,), dtype=jnp.float32)

    # f32 output (exact PyTorch parity) — X2 provided / Gram / ragged shapes.
    K12 = jax.block_until_ready(rbf_kernel(X1, log_lengthscale, log_variance, X2))
    K11 = jax.block_until_ready(rbf_kernel(X1, log_lengthscale, log_variance))
    Kodd = jax.block_until_ready(
        rbf_kernel(X1[:100], log_lengthscale, log_variance, X2[:76]))
    # Non-resident X2 path (j-outer grid) forced, to exercise both branches.
    K12_nr = jax.block_until_ready(
        rbf_kernel(X1, log_lengthscale, log_variance, X2, force_x2_resident=False))
    # Recommended production setting: bf16 output (halves HBM writeback).
    K12_bf16 = jax.block_until_ready(
        rbf_kernel(X1, log_lengthscale, log_variance, X2, out_dtype=jnp.bfloat16))

    ref12 = rbf_reference(X1, log_lengthscale, log_variance, X2)
    ref11 = rbf_reference(X1, log_lengthscale, log_variance)
    refodd = rbf_reference(X1[:100], log_lengthscale, log_variance, X2[:76])

    assert jnp.allclose(K12, ref12, atol=2e-4, rtol=2e-4)
    assert jnp.allclose(K11, ref11, atol=2e-4, rtol=2e-4)
    assert jnp.allclose(Kodd, refodd, atol=2e-4, rtol=2e-4)
    assert jnp.allclose(K12_nr, ref12, atol=2e-4, rtol=2e-4)
    assert jnp.allclose(K12_bf16.astype(jnp.float32), ref12, atol=5e-2, rtol=5e-2)
    # Gram diagonal never exceeds the variance (clamp on c*sqdist).
    assert bool(jnp.all(jnp.diag(K11) <= jnp.exp(log_variance)[0] + 1e-6))

    print("KERNEL_OK")
</pallas_src>

<mosaic_0001>
module attributes {stable_mosaic.version = 11 : i64} {
  func.func @kernel(%arg0: i32, %arg1: i32, %arg2: memref<1xf32, #tpu.memory_space<smem>>, %arg3: memref<64x8xf32, #tpu.memory_space<vmem>>, %arg4: memref<64x1xf32, #tpu.memory_space<vmem>>, %arg5: memref<1x8x128xf32, #tpu.memory_space<vmem>>, %arg6: memref<1x128xf32, #tpu.memory_space<vmem>>, %arg7: memref<64x128xf32, #tpu.memory_space<vmem>>) attributes {dimension_semantics = [#tpu.dimension_semantics<parallel>, #tpu.dimension_semantics<parallel>], iteration_bounds = array<i64: 2, 1>, scalar_prefetch = 1 : i64, scratch_operands = 0 : i64, tpu.core_type = #tpu.core_type<tc>, window_params = [{transform_indices = @transform_0, window_bounds = array<i64: 64, 8>}, {transform_indices = @transform_1, window_bounds = array<i64: 64, 1>}, {pipeline_mode = #tpu.pipeline_mode<synchronous>, transform_indices = @transform_2, window_bounds = array<i64: 1, 8, 128>}, {transform_indices = @transform_3, window_bounds = array<i64: 1, 128>}, {transform_indices = @transform_4, window_bounds = array<i64: 64, 128>}]} {
    %c0 = arith.constant 0 : index
    %0 = memref.load %arg2[%c0] : memref<1xf32, #tpu.memory_space<smem>>
    %1 = arith.index_cast %arg1 : i32 to index
    %c0_0 = arith.constant 0 : index
    %c0_1 = arith.constant 0 : index
    %2 = vector.load %arg5[%1, %c0_0, %c0_1] : memref<1x8x128xf32, #tpu.memory_space<vmem>>, vector<1x8x128xf32>
    %3 = vector.shape_cast %2 : vector<1x8x128xf32> to vector<8x128xf32>
    %c0_2 = arith.constant 0 : index
    %c0_3 = arith.constant 0 : index
    %4 = vector.load %arg4[%c0_2, %c0_3] : memref<64x1xf32, #tpu.memory_space<vmem>>, vector<64x1xf32>
    %c0_4 = arith.constant 0 : index
    %c0_5 = arith.constant 0 : index
    %5 = vector.load %arg6[%c0_4, %c0_5] : memref<1x128xf32, #tpu.memory_space<vmem>>, vector<1x128xf32>
    %6 = vector.broadcast %4 : vector<64x1xf32> to vector<64x128xf32>
    %7 = vector.broadcast %5 : vector<1x128xf32> to vector<64x128xf32>
    %8 = arith.addf %6, %7 : vector<64x128xf32>
    %c0_6 = arith.constant 0 : index
    %c0_7 = arith.constant 0 : index
    %9 = vector.load %arg3[%c0_6, %c0_7] : memref<64x8xf32, #tpu.memory_space<vmem>>, vector<64x8xf32>
    %cst = arith.constant dense<0.000000e+00> : vector<64x128xf32>
    %10 = tpu.matmul %9, %3, %cst {dimension_numbers = #tpu.dot_dimension_numbers<[1], [0], [0], [1], [0, 0, 1, 1], [], []>} : vector<64x8xf32>, vector<8x128xf32>, vector<64x128xf32> -> vector<64x128xf32>
    %11 = arith.addf %8, %10 : vector<64x128xf32>
    %cst_8 = arith.constant 0.000000e+00 : f32
    %12 = vector.broadcast %cst_8 : f32 to vector<64x128xf32>
    %13 = arith.minimumf %11, %12 : vector<64x128xf32>
    %14 = math.exp %13 : vector<64x128xf32>
    %15 = vector.broadcast %0 : f32 to vector<64x128xf32>
    %16 = arith.mulf %15, %14 : vector<64x128xf32>
    %c0_9 = arith.constant 0 : index
    %c0_10 = arith.constant 0 : index
    %17 = vector.load %arg7[%c0_9, %c0_10] : memref<64x128xf32, #tpu.memory_space<vmem>>, vector<64x128xf32>
    tpu.vector_store %arg7[%c0_9, %c0_10], %16 {strides = array<i32>} : memref<64x128xf32, #tpu.memory_space<vmem>>, vector<64x128xf32>,
    return
  }
  func.func @transform_0(%arg0: i32, %arg1: i32, %arg2: memref<1xf32, #tpu.memory_space<smem>>) -> (i32, i32) {
    %c0_i32 = arith.constant 0 : i32
    %c0_i32_0 = arith.constant 0 : i32
    return %arg0, %c0_i32 : i32, i32
  }
  func.func @transform_1(%arg0: i32, %arg1: i32, %arg2: memref<1xf32, #tpu.memory_space<smem>>) -> (i32, i32) {
    %c0_i32 = arith.constant 0 : i32
    %c0_i32_0 = arith.constant 0 : i32
    return %arg0, %c0_i32 : i32, i32
  }
  func.func @transform_2(%arg0: i32, %arg1: i32, %arg2: memref<1xf32, #tpu.memory_space<smem>>) -> (i32, i32, i32) {
    %c0_i32 = arith.constant 0 : i32
    %c0_i32_0 = arith.constant 0 : i32
    %c0_i32_1 = arith.constant 0 : i32
    %c0_i32_2 = arith.constant 0 : i32
    return %c0_i32, %c0_i32_0, %c0_i32_1 : i32, i32, i32
  }
  func.func @transform_3(%arg0: i32, %arg1: i32, %arg2: memref<1xf32, #tpu.memory_space<smem>>) -> (i32, i32) {
    %c0_i32 = arith.constant 0 : i32
    %c0_i32_0 = arith.constant 0 : i32
    return %c0_i32, %arg1 : i32, i32
  }
  func.func @transform_4(%arg0: i32, %arg1: i32, %arg2: memref<1xf32, #tpu.memory_space<smem>>) -> (i32, i32) {
    %c0_i32 = arith.constant 0 : i32
    return %arg0, %arg1 : i32, i32
  }
}

</mosaic_0001>

<bundles_post_ra>
// kernel: tpu_custom_call.1
= control target key start
LH: loop header
LB: loop body
LE: loop exit
PB: predicated region body
PF: predicated region fallthrough
CT: control target
= control target key end

     0   :  { %s997_s0 = inlined_call_operand.<no memory space> [shape: f32[1], index: 0, kind: input, shape index: {}]   ;;  %s998_s1 = inlined_call_operand.vmem [shape: f32[128,8], index: 1, kind: input, shape index: {}]   ;;  %s999_s2 = inlined_call_operand.vmem [shape: f32[128,1], index: 2, kind: input, shape index: {}]   ;;  %s1000_s3 = inlined_call_operand.vmem [shape: f32[1,8,128], index: 3, kind: input, shape index: {}]   ;;  %s1001_s4 = inlined_call_operand.vmem [shape: f32[1,128], index: 4, kind: input, shape index: {}]   ;;  %s1002_s5 = inlined_call_operand.hbm [shape: f32[128,128], index: 5, kind: output, shape index: {}]  }
   0x1   :  { %10 = sst [smem:[#allocation3]] %s997_s0 }
   0x2   :  { %11 = vsyncpa [#allocation5], 0 }
   0x3   :  { %13 = vsyncpa [#allocation5 + $0x1], 0  ;;  %s862_s20 = smov 0   ;;  %s864_s21 = smov 0  }
   0x4   :  { %s866_s22 = smov 0   ;;  %s868_s23 = smov 0  }
   0x5   :  { %s870_s24 = smov 0   ;;  %s872_s25 = smov 0  }
   0x6 LB: > { %s618_s0 = sadd.s32 4294967295, %s823_s25   ;;  %s619_s26 = sadd.s32 4294967294, %s823_s25   ;;  %s823_s25 = sphi %s872_s25, %s19_s25   ;;  %s819_s24 = sphi %s870_s24, %s1009_s24   ;;  %s815_s23 = sphi %s868_s23, %s1008_s23   ;;  %s811_s22 = sphi %s866_s22, %s1007_s22   ;;  %s807_s21 = sphi %s864_s21, %s1006_s21   ;;  %s803_s20 = sphi %s862_s20, %s1005_s20  }
   0x7   : > { %s31_s27 = sadd.s32 1, %s819_s24  ;;  %s139_s28 = sadd.s32 1, %s811_s22 }
   0x8   : > { %p33_p0 = scmp.ge.s32.totalorder %s31_s27, 2  ;;  %p149_p1 = scmp.ne.s32.totalorder %s811_s22, %s807_s21 }
   0x9   : > { %p150_p2 = scmp.eq.s32.totalorder %s618_s0, 1  ;;  %p155_p3 = scmp.ne.s32.totalorder %s807_s21, %s803_s20 }
   0xa   : > { %s1011_s27 = smov (%p33_p0, %s31_s27), 0  ;;  %p156_p5 = scmp.eq.s32.totalorder %s619_s26, 1 }
   0xb   : > { %p902_p4 = por %p150_p2, %p149_p1  ;;  %s134_s30 = ssub.s32 %s819_s24, %s1011_s27 }
   0xc   : > { %p623_p6 = scmp.ge.s32.totalorder %s823_s25, 1  ;;  %p137_p7 = scmp.eq.s32.totalorder %s134_s30, 0 }
   0xd   : > { %p909_p8 = por %p156_p5, %p155_p3  ;;  %p201_p9 = scmp.lt.s32.totalorder %s823_s25, 3 }
   0xe   : > { %s915_s7 = scalar_select %p137_p7, %s811_s22, %s139_s28  }
   0xf   : > { %p202_p10 = pnand %p623_p6, %p201_p9 }
  0x10   : > { %v254_v0 = vld [vmem:[%s1000_s3] sm:$0xff] (!%p202_p10)  ;;  %s625_s10 = sshll.u32 (!%p202_p10), %s815_s23, 3  ;;  %v825_v1 = vmov (!%p202_p10), 0   ;;  %vm326_vm0 = vcmask (!%p202_p10), 64512   ;;  %s251_s0 = sld [smem:[#allocation3]] (!%p202_p10) }
  0x11   : > { %205 = sbr.rel (%p202_p10) target bundleno = 282 (0x11a), region = 36  ;;  %653 = vmatprep.subr.mxu0 (!%p202_p10), %v254_v0  ;;  %667 = vmatprep.subr.mxu1 (!%p202_p10), %v254_v0  ;;  %p236_p11 = scmp.lt.s32.totalorder (!%p202_p10), %s625_s10, 15  ;;  %v629_v24 = vld [vmem:[%s1001_s4] ss:$0 sm:$0xff] (!%p202_p10) }
  0x12   : > { %654 = vmatpush3.msra.mxu0 (!%p202_p10), %v254_v0  ;;  %668 = vmatpush3.msra.mxu1 (!%p202_p10), %v254_v0  ;;  %s232_s26 = sand.u32 (!%p202_p10), 1, %s807_s21   ;;  %s643_s8 = sshll.u32 (!%p202_p10), %s815_s23, 10 }
  0x13   : > { %728 = vset.pattern.permute.xlu1 (!%p202_p10), %v825_v1  ;;  %727 = vset.pattern.permute.xlu0 (!%p202_p10), %v825_v1  ;;  %s624_s28 = sshll.u32 (!%p202_p10), %s232_s26, 6  ;;  %s945_s12 = scalar_lea.hbm (!%p202_p10), %s1002_s5, %s643_s8 }
  0x14   : > { %s234_s30 = scalar_lea.vmem (!%p202_p10), [#allocation4], %s624_s28  ;;  %s951_s23 = scalar_lea.sflag (!%p202_p10), [#allocation5], %s232_s26 }
  0x15   : > { %s520_s9 = sshll.u32 (!%p202_p10), %s234_s30, 4  ;;  %s947_s9 = int_to_ptr.vmem [resolvable:$true] %s520_s9 }
  0x16   : > { %s745_s13 = scalar_lea.vmem (!%p202_p10), %s947_s9, 1024 }
  0x17   : > { %p746_p12 = scmp.ne.s32.totalorder (!%p202_p10), %s947_s9, %s745_s13 }
  0x18   : > { %s1013_s10 = smov (!%p236_p11, %s625_s10), 15 }
  0x19   : > { %s626_s11 = sshll.u32 %s1013_s10, 3  ;;  %p747_p13 = pnand %p746_p12, %p902_p4 }
  0x1a   : > { %s239_s14 = scalar_lea.vmem %s998_s1, %s626_s11  ;;  %s245_s17 = scalar_lea.vmem %s999_s2, %s626_s11 }
  0x1b   : > { %v318_v2 = vld [vmem:[%s239_s14] sm:$0xff]  ;;  %v319_v4 = vld [vmem:[%s239_s14 + $0x8] sm:$0xff]  ;;  %v320_v6 = vld [vmem:[%s239_s14 + $0x10] sm:$0xff]  ;;  %p748_p0 = pneg %p747_p13 }
  0x1c   : > { %v322_v3 = vld [vmem:[%s239_s14 + $0x20] sm:$0xff]  ;;  %655 = vmatprep.mubr.msk.f32.mxu0 %vm326_vm0, %v318_v2  ;;  %v323_v5 = vld [vmem:[%s239_s14 + $0x28] sm:$0xff]  ;;  %v324_v7 = vld [vmem:[%s239_s14 + $0x30] sm:$0xff] }
  0x1d   : > { %661 = vmatprep.mubr.msk.f32.mxu1 %vm326_vm0, %v322_v3  ;;  %656 = vmatmul.mubr.msk.f32.vlgmr.msra.gmra.mrb[0].mxu0 %vm326_vm0, %v319_v4  ;;  %v257_v8 = vld [vmem:[%s245_s17 + $0x10] sm:$0xff]  ;;  %v321_v9 = vld [vmem:[%s239_s14 + $0x18] sm:$0xff]  ;;  %v255_v11 = vld [vmem:[%s245_s17] sm:$0xff]  ;;  %v488_v3 = vstv %s251_s0 }
  0x1e   : > { %662 = vmatmul.mubr.msk.f32.vlgmr.msra.gmra.mrb[0].mxu1 %vm326_vm0, %v323_v5  ;;  %658 = vmatprep.mubr.msk.f32.mxu0 %vm326_vm0, %v320_v6  ;;  %v325_v10 = vld [vmem:[%s239_s14 + $0x38] sm:$0xff]  ;;  %v256_v13 = vld [vmem:[%s245_s17 + $0x8] sm:$0xff]  ;;  %v259_v15 = vld [vmem:[%s245_s17 + $0x20] sm:$0xff]  ;;  %s826_s14 = smov [#allocation4]  }
  0x1f   : > { %664 = vmatprep.mubr.msk.f32.mxu1 %vm326_vm0, %v324_v7  ;;  %276 = vperm.xlu1 %728, %v257_v8   ;;  %v258_v12 = vld [vmem:[%s245_s17 + $0x18] sm:$0xff]  ;;  %v260_v14 = vld [vmem:[%s245_s17 + $0x28] sm:$0xff]  ;;  %v261_v17 = vld [vmem:[%s245_s17 + $0x30] sm:$0xff]  ;;  %s749_s15 = sshll.u32 %s826_s14, 4  ;;  %s750_s15 = int_to_ptr.vmem [resolvable:$false] %s749_s15 }
  0x20   : > { %266 = vperm.xlu0 %727, %v255_v11   ;;  %v262_v16 = vld [vmem:[%s245_s17 + $0x38] sm:$0xff]  ;;  %s751_s16 = scalar_lea.vmem %s750_s15, 2048  ;;  %p752_p1 = scmp.lt.s32.totalorder %s947_s9, %s750_s15 }
  0x21   : > { %659 = vmatmul.mubr.msk.f32.gmra.mrb[2].mxu0 %vm326_vm0, %v321_v9  ;;  %p753_p2 = scmp.lt.s32.totalorder %s751_s16, %s745_s13 }
  0x22   : > { %665 = vmatmul.mubr.msk.f32.gmra.mrb[2].mxu1 %vm326_vm0, %v325_v10 }
  0x23   : > { %281 = vperm.xlu1 %728, %v258_v12   ;;  %p754_p3 = por %p753_p2, %p752_p1 }
  0x24   : > { %271 = vperm.xlu0 %727, %v256_v13  }
  0x25   : > { %p755_p5 = pnand %p754_p3, %p748_p0 }
  0x27   : > { %291 = vperm.xlu1 %728, %v260_v14  }
  0x28   : > { %286 = vperm.xlu0 %727, %v259_v15  }
  0x2b   : > { %301 = vperm.xlu1 %728, %v262_v16  }
  0x2c   : > { %296 = vperm.xlu0 %727, %v261_v17  }
  0x9e   : > { %v277_v18 = vpop.permute.xlu1 %276 }
  0x9f   : > { %v267_v19 = vpop.permute.xlu0 %266  ;;  %v312_v43 = vadd.f32 %v629_v24, %v277_v18 }
  0xa0   : > { %v310_v29 = vadd.f32 %v629_v24, %v267_v19 }
  0xa2   : > { %v282_v20 = vpop.permute.xlu1 %281 }
  0xa3   : > { %v272_v21 = vpop.permute.xlu0 %271  ;;  %v313_v39 = vadd.f32 %v629_v24, %v282_v20 }
  0xa4   : > { %v311_v25 = vadd.f32 %v629_v24, %v272_v21 }
  0xa6   : > { %v292_v22 = vpop.permute.xlu1 %291 }
  0xa7   : > { %v287_v23 = vpop.permute.xlu0 %286  ;;  %v315_v26 = vadd.f32 %v629_v24, %v292_v22 }
  0xa8   : > { %v314_v30 = vadd.f32 %v629_v24, %v287_v23 }
  0xaa   : > { %v302_v27 = vpop.permute.xlu1 %301 }
  0xab   : > { %v297_v28 = vpop.permute.xlu0 %296  ;;  %v317_v40 = vadd.f32 %v629_v24, %v302_v27 }
  0xac   : > { %v316_v44 = vadd.f32 %v629_v24, %v297_v28 }
  0xf0   : > { %v657_v31 = vpop.f32.mrb[0].mxu0 }
  0xf1   : > { %v663_v32 = vpop.f32.mrb[0].mxu1  ;;  %v457_v33 = vadd.f32 %v657_v31, %v311_v25  ;;  %v417_v35 = vpop.f32.mrb[1].mxu0 }
  0xf2   : > { %v461_v34 = vadd.f32 %v663_v32, %v315_v26  ;;  %v437_v36 = vpop.f32.mrb[1].mxu1  ;;  %v456_v37 = vadd.f32 %v417_v35, %v310_v29 }
  0xf3   : > { %v460_v38 = vadd.f32 %v437_v36, %v314_v30  ;;  %v465_v41 = vmin.f32 %v457_v33, 0.0 }
  0xf4   : > { %v469_v42 = vmin.f32 %v461_v34, 0.0  ;;  %v464_v45 = vmin.f32 %v456_v37, 0.0  ;;  %v660_v47 = vpop.f32.mrb[2].mxu0 }
  0xf5   : > { %v468_v46 = vmin.f32 %v460_v38, 0.0  ;;  %v666_v48 = vpop.f32.mrb[2].mxu1  ;;  %v474_v49 = vmul.f32 1.442695, %v465_v41  ;;  %v459_v51 = vadd.f32 %v660_v47, %v313_v39  ;;  %v427_v53 = vpop.f32.mrb[3].mxu0 }
  0xf6   : > { %v482_v50 = vmul.f32 1.442695, %v469_v42  ;;  %v463_v52 = vadd.f32 %v666_v48, %v317_v40  ;;  %v447_v54 = vpop.f32.mrb[3].mxu1  ;;  %v472_v55 = vmul.f32 1.442695, %v464_v45  ;;  %v458_v57 = vadd.f32 %v427_v53, %v312_v43 }
  0xf7   : > { %v480_v56 = vmul.f32 1.442695, %v468_v46  ;;  %v462_v58 = vadd.f32 %v447_v54, %v316_v44  ;;  %729 = vpow2.f32 %v474_v49  ;;  %v467_v59 = vmin.f32 %v459_v51, 0.0 }
  0xf8   : > { %v471_v60 = vmin.f32 %v463_v52, 0.0  ;;  %731 = vpow2.f32 %v482_v50  ;;  %v466_v61 = vmin.f32 %v458_v57, 0.0 }
  0xf9   : > { %v470_v62 = vmin.f32 %v462_v58, 0.0  ;;  %733 = vpow2.f32 %v472_v55  ;;  %v478_v63 = vmul.f32 1.442695, %v467_v59 }
  0xfa   : > { %v486_v0 = vmul.f32 1.442695, %v471_v60  ;;  %735 = vpow2.f32 %v480_v56  ;;  %v476_v1 = vmul.f32 1.442695, %v466_v61 }
  0xfb   : > { %v484_v2 = vmul.f32 1.442695, %v470_v62  ;;  %737 = vpow2.f32 %v478_v63 }
  0xfc   : > { %739 = vpow2.f32 %v486_v0 }
  0xfd   : > { %741 = vpow2.f32 %v476_v1 }
  0xfe   : > { %743 = vpow2.f32 %v484_v2 }
 0x101   : > { %v730_v4 = vpop.eup %729 }
 0x102   : > { %v732_v5 = vpop.eup %731  ;;  %v490_v6 = vmul.f32 %v730_v4, %v488_v3 }
 0x103   : > { %v734_v7 = vpop.eup %733  ;;  %v494_v8 = vmul.f32 %v732_v5, %v488_v3 }
 0x104   : > { %v736_v9 = vpop.eup %735  ;;  %498 = vst [vmem:[%s234_s30 + $0x8] sm:$0xff] %v490_v6  ;;  %v489_v10 = vmul.f32 %v734_v7, %v488_v3 }
 0x105   : > { %v738_v11 = vpop.eup %737  ;;  %502 = vst [vmem:[%s234_s30 + $0x28] sm:$0xff] %v494_v8  ;;  %v493_v12 = vmul.f32 %v736_v9, %v488_v3 }
 0x106   : > { %v740_v13 = vpop.eup %739  ;;  %497 = vst [vmem:[%s234_s30] sm:$0xff] %v489_v10  ;;  %v492_v14 = vmul.f32 %v738_v11, %v488_v3 }
 0x107   : > { %v742_v15 = vpop.eup %741  ;;  %501 = vst [vmem:[%s234_s30 + $0x20] sm:$0xff] %v493_v12  ;;  %v496_v16 = vmul.f32 %v740_v13, %v488_v3 }
 0x108   : > { %v744_v17 = vpop.eup %743  ;;  %500 = vst [vmem:[%s234_s30 + $0x18] sm:$0xff] %v492_v14  ;;  %v491_v18 = vmul.f32 %v742_v15, %v488_v3 }
 0x109   : > { %504 = vst [vmem:[%s234_s30 + $0x38] sm:$0xff] %v496_v16  ;;  %v495_v19 = vmul.f32 %v744_v17, %v488_v3 }
 0x10a   : > { %499 = vst [vmem:[%s234_s30 + $0x10] sm:$0xff] %v491_v18 }
 0x10b   : > { %503 = vst [vmem:[%s234_s30 + $0x30] sm:$0xff] %v495_v19 }
 0x10c   : > { %758 = shalt.err (!%p755_p5)
}
 0x10d   : > { %s759_s17 = scalar_lea.hbm %s945_s12, 1024  ;;  %s763_s0 = scalar_lea.hbm %s1002_s5, 2048 }
 0x10e   : > { %p760_p6 = scmp.ne.s32.totalorder %s945_s12, %s759_s17  ;;  %p764_p10 = scmp.lt.u32.totalorder %s945_s12, %s1002_s5 }
 0x10f   : > { %p765_p11 = scmp.lt.u32.totalorder %s763_s0, %s759_s17  ;;  %p767_p13 = scmp.lt.u32.totalorder %s759_s17, %s945_s12 }
 0x110   : > { %p761_p7 = pnand %p760_p6, %p902_p4 }
 0x111   : > { %p766_p12 = por %p765_p11, %p764_p10 }
 0x112   : > { %p762_p9 = pneg %p761_p7 }
 0x113   : > { %p768_p0 = por %p767_p13, %p766_p12 }
 0x115   : > { %p769_p1 = pnand %p768_p0, %p762_p9 }
 0x117   : > { %772 = shalt.err (!%p769_p1)
}
 0x118   : > { %s827_s30 = smov 128   ;;  %s828_s8 = smov 8  }
 0x119   : > { %669 = dma.vmem_to_hbm [thread:$0]  (%p902_p4), %s947_s9, 1024, %s945_s12, %s951_s23, %s827_s30, %s827_s30, %s828_s8  }
 0x11a PF: > { %p675_p2 = scmp.ge.s32.totalorder %s823_s25, 2  ;;  %s535_s10 = sand.u32 1, %s803_s20  }
 0x11b   : > { %s536_s11 = scalar_lea.sflag [#allocation5], %s535_s10 }
 0x11c   : > { %p672_p3 = pnand %p675_p2, %p909_p8 }
 0x11e   : > { %798 = dma.done.wait (!%p672_p3), %s536_s11, 1024  }
 0x11f   : > { %800 = vsyncadd (!%p672_p3), %s536_s11, 4294966272  ;;  %s19_s25 = sadd.s32 1, %s823_s25   ;;  %s1005_s20 = smov %s807_s21 }
 0x120   : > { %p16_p5 = scmp.ge.s32.totalorder %s19_s25, 4   ;;  %s1006_s21 = smov %s811_s22 }
 0x121   : > { %s1007_s22 = smov %s915_s7  ;;  %s1008_s23 = smov %s819_s24 }
 0x122   : > { %s1009_s24 = smov %s1011_s27  ;;  %18 = sbr.rel (!%p16_p5) target bundleno = 6 (0x6), region = 78 }
 0x129   :  { %541 = vsyncpa [#allocation5], 1 }
 0x12a   :  { %543 = vsyncpa [#allocation5 + $0x1], 1 }

</bundles_post_ra>
